<compile_context>
chip_gen: v5e
topology: v5e:2x2
jax: 0.10.0
libtpu: 0.0.40
codegen_flags: <defaults>
</compile_context>

<pallas_src>
import math
import functools

import jax
import jax.numpy as jnp
import numpy as np
from jax.experimental import pallas as pl
from jax.experimental.pallas import tpu as pltpu

# ---------------- configuration (small, consistent with the module) ----------------
B = 2          # batch
S = 8          # sequence length
E = 32         # embed_dim
H = 4          # num_heads
DH = E // H    # head_dim
F = 64         # ff_dim
EPS = 1e-5     # nn.LayerNorm default eps
LANES = 128    # TPU lane width (packing target)

# Column offsets inside the packed weight slab (E rows).
_QKV0, _QKV1 = 0, 3 * E               # fused, head-interleaved QKV      (E, 3E)
_WO0, _WO1 = _QKV1, _QKV1 + E         # attention output projection      (E, E)
_W10, _W11 = _WO1, _WO1 + F           # FFN first linear                 (E, F)
_W20, _W21 = _W11, _W11 + F           # FFN second linear, transposed    (E, F) == W2.T
W_COLS = _W21                          # 256 lanes total


def encoder_block_kernel(x_ref, w_ref, vecs_ref, o_ref, *,
                         b_blk, compute_dtype, approx_recip):
    """Whole encoder block for b_blk sequences (b_blk*S rows) in one invocation.

    x_ref    : (b_blk*S, E) float32  flattened rows
    w_ref    : (E, W_COLS)  compute dtype, packed [QKV | Wo | W1 | W2^T]
    vecs_ref : (8, 128)     float32, packed small vectors, rows:
               0: bqkv(3E, head-interleaved)  1: bo(E)  2: ln1 g(E)  3: ln1 b(E)
               4: bf1(F)  5: bf2(E)  6: ln2 g(E)  7: ln2 b(E)
    o_ref    : (b_blk*S, E) float32
    """
    cd = compute_dtype
    m = b_blk * S

    x = x_ref[...]                           # (m, E) f32
    w = w_ref[...]                           # (E, W_COLS) cd
    vecs = vecs_ref[...]                     # (8, 128) f32

    wqkv = w[:, _QKV0:_QKV1]
    wo = w[:, _WO0:_WO1]
    w1 = w[:, _W10:_W11]
    w2t = w[:, _W20:_W21]

    bqkv = vecs[0:1, 0:3 * E]
    bo = vecs[1:2, 0:E]
    g1, be1 = vecs[2:3, 0:E], vecs[3:4, 0:E]
    bf1 = vecs[4:5, 0:F]
    bf2 = vecs[5:6, 0:E]
    g2, be2 = vecs[6:7, 0:E], vecs[7:8, 0:E]

    def layer_norm(v, gamma, beta):
        # One pass: mean and mean-of-squares as two independent lane reductions.
        mu = jnp.mean(v, axis=-1, keepdims=True)
        ms = jnp.mean(v * v, axis=-1, keepdims=True)
        inv = jax.lax.rsqrt(ms - mu * mu + EPS)
        return (v - mu) * inv * gamma + beta

    # ---------------- fused QKV projection (one wide matmul) ----------------
    qkv = jnp.dot(x.astype(cd), wqkv, preferred_element_type=jnp.float32) + bqkv
    qkv_c = qkv.astype(cd)                   # (m, 3E)

    # Columns are head-interleaved: head h owns lanes [h*3DH, (h+1)*3DH) = [q|k|v].
    # One stack of H full-height slices + three static lane slices gives all heads.
    qkv_h = jnp.stack(
        [qkv_c[:, h * 3 * DH:(h + 1) * 3 * DH] for h in range(H)], axis=0)  # (H,m,3DH)
    qh = qkv_h[:, :, 0:DH]                   # (H, m, DH)  (pre-scaled by 1/sqrt(DH))
    kh = qkv_h[:, :, DH:2 * DH]
    vh = qkv_h[:, :, 2 * DH:3 * DH]

    # ---------------- multi-head self-attention ----------------
    # One batched einsum pair over heads; all batch rows are processed together and
    # separated with a compile-time block-diagonal additive mask (exact).
    s = jnp.einsum("hmd,hnd->hmn", qh, kh, preferred_element_type=jnp.float32)

    if b_blk > 1:
        zro = jnp.zeros((S, S), jnp.float32)
        neg = jnp.full((S, S), -1e30, jnp.float32)
        rows = [jnp.concatenate([zro if c == r else neg for c in range(b_blk)], axis=1)
                for r in range(b_blk)]
        blk_mask = jnp.concatenate(rows, axis=0)          # (m, m) constant
        # TODO(synk): src_key_padding_mask would be folded into this mask.
        s = s + blk_mask[None, :, :]

    s = s - jnp.max(s, axis=-1, keepdims=True)
    p = jnp.exp(s)
    p = p * pl.reciprocal(jnp.sum(p, axis=-1, keepdims=True), approx=approx_recip)

    ctx = jnp.einsum("hmn,hnd->hmd", p.astype(cd), vh,
                     preferred_element_type=jnp.float32)  # (H, m, DH)

    # Merge heads with a single lane-concat (no nested per-batch concatenates).
    ctx_rows = jnp.concatenate([ctx[h] for h in range(H)], axis=-1)       # (m, E)

    attn = jnp.dot(ctx_rows.astype(cd), wo, preferred_element_type=jnp.float32) + bo

    # residual + LayerNorm 1 (f32)
    y1 = layer_norm(x + attn, g1, be1)

    # ---------------- feed-forward ----------------
    hid = jnp.dot(y1.astype(cd), w1, preferred_element_type=jnp.float32) + bf1
    hid = jnp.maximum(hid, 0.0)
    # W2 stored transposed in the slab -> transposed-contraction dot_general.
    ffn = jax.lax.dot_general(hid.astype(cd), w2t,
                              dimension_numbers=(((1,), (1,)), ((), ())),
                              preferred_element_type=jnp.float32) + bf2

    # residual + LayerNorm 2 (f32)
    y2 = layer_norm(y1 + ffn, g2, be2)

    # TODO(synk): E=32 output is a masked sub-128-lane store; negligible at this size.
    o_ref[...] = y2.astype(o_ref.dtype)


def _interleave_heads_qkv(wq, wk, wv):
    """Reorder QKV columns head-major: [q_h | k_h | v_h] per head, so the kernel can
    split q/k/v for all heads with one stack + three lane slices."""
    blocks = []
    for h in range(H):
        sl = slice(h * DH, (h + 1) * DH)
        blocks += [wq[:, sl], wk[:, sl], wv[:, sl]]
    return jnp.concatenate(blocks, axis=1)


def prepare_params(params, compute_dtype=jnp.float32):
    """One-time host-side transform: fuse QKV (head-interleaved, softmax scale folded
    into the Q columns), pack all dense weights into one (E, 256) slab, and pack the
    ten small vectors into one (8, 128) operand."""
    scale = 1.0 / math.sqrt(DH)
    wqkv = _interleave_heads_qkv(params["wq"] * scale, params["wk"], params["wv"])
    bqkv = _interleave_heads_qkv(params["bq"] * scale, params["bk"], params["bv"])

    wslab = jnp.concatenate(
        [wqkv, params["wo"], params["w1"], params["w2"].T],
        axis=1).astype(compute_dtype)                                    # (E, 256)

    def row(v):
        return jnp.pad(v, ((0, 0), (0, LANES - v.shape[1])))

    vecs = jnp.concatenate(
        [row(bqkv), row(params["bo"]),
         row(params["g1"]), row(params["be1"]),
         row(params["bf1"]), row(params["bf2"]),
         row(params["g2"]), row(params["be2"])],
        axis=0).astype(jnp.float32)                                      # (8, 128)

    return {"wslab": wslab, "vecs": vecs}


def default_matmul_dtype():
    """bf16 matmul inputs on bf16-native-MXU generations (v6e / v7x); f32 elsewhere
    (v5e's VPU/EUP have no bf16 path and the tight f32 validation is kept)."""
    try:
        kind = jax.devices()[0].device_kind.lower()
    except Exception:
        return jnp.float32
    if any(tag in kind for tag in ("v6", "v7", "trillium", "ironwood")):
        return jnp.bfloat16
    return jnp.float32


def transformer_encoder_block(x, prepped):
    """x: (B, S, E) float32. prepped: output of prepare_params()."""
    b, s, e = x.shape
    m = b * s
    x_flat = x.reshape(m, e)

    compute_dtype = prepped["wslab"].dtype
    approx_recip = bool(compute_dtype == jnp.bfloat16)   # exact recip in the f32 path

    kernel = functools.partial(encoder_block_kernel, b_blk=b,
                               compute_dtype=compute_dtype,
                               approx_recip=approx_recip)

    # Single invocation: at B*S = 16 rows any batch split across TensorCores (v7x)
    # duplicates weight DMA and per-step overhead for ~0.1 MFLOP of work.
    # TODO(synk): for real sizes, batch B*S >= 128/256 rows per call and shard that
    #             row dimension over a "parallel" grid axis.
    out = pl.pallas_call(
        kernel,
        out_shape=jax.ShapeDtypeStruct((m, e), x.dtype),
        grid_spec=pltpu.PrefetchScalarGridSpec(
            num_scalar_prefetch=0,
            grid=(1,),
            in_specs=[
                pl.BlockSpec((m, e), lambda i: (0, 0)),        # activations
                pl.BlockSpec((E, W_COLS), lambda i: (0, 0)),   # packed weight slab
                pl.BlockSpec((8, LANES), lambda i: (0, 0)),    # packed biases / LN vecs
            ],
            out_specs=pl.BlockSpec((m, e), lambda i: (0, 0)),
        ),
        compiler_params=pltpu.CompilerParams(
            dimension_semantics=("arbitrary",)),
    )(x_flat, prepped["wslab"], prepped["vecs"])

    return out.reshape(b, s, e)


# ---------------- pure-JAX reference (mirrors the PyTorch module) ----------------
def _layernorm_ref(x, gamma, beta):
    mu = jnp.mean(x, axis=-1, keepdims=True)
    var = jnp.mean(jnp.square(x - mu), axis=-1, keepdims=True)
    return (x - mu) * jax.lax.rsqrt(var + EPS) * gamma + beta


def reference_forward(x, p):
    q = x @ p["wq"] + p["bq"]
    k = x @ p["wk"] + p["bk"]
    v = x @ p["wv"] + p["bv"]

    def split(t):  # (B, S, H, DH) -> (B, H, S, DH)
        return t.reshape(B, S, H, DH).transpose(0, 2, 1, 3)

    qh, kh, vh = split(q), split(k), split(v)
    scores = jnp.einsum("bhqd,bhkd->bhqk", qh, kh) / math.sqrt(DH)
    w = jax.nn.softmax(scores, axis=-1)
    ctx = jnp.einsum("bhqk,bhkd->bhqd", w, vh).transpose(0, 2, 1, 3).reshape(B, S, E)
    attn = ctx @ p["wo"] + p["bo"]
    x1 = _layernorm_ref(x + attn, p["g1"], p["be1"])
    ffn = jnp.maximum(x1 @ p["w1"] + p["bf1"], 0.0) @ p["w2"] + p["bf2"]
    return _layernorm_ref(x1 + ffn, p["g2"], p["be2"])


def make_params(key):
    ks = jax.random.split(key, 8)
    s = 0.1
    return {
        # linear weights stored as (in, out) == PyTorch weight.T, so y = x @ W + b
        "wq": s * jax.random.normal(ks[0], (E, E), jnp.float32),
        "wk": s * jax.random.normal(ks[1], (E, E), jnp.float32),
        "wv": s * jax.random.normal(ks[2], (E, E), jnp.float32),
        "bq": s * jax.random.normal(ks[3], (1, E), jnp.float32),
        "bk": jnp.zeros((1, E), jnp.float32),
        "bv": jnp.zeros((1, E), jnp.float32),
        "wo": s * jax.random.normal(ks[4], (E, E), jnp.float32),
        "bo": jnp.zeros((1, E), jnp.float32),
        "g1": jnp.ones((1, E), jnp.float32),
        "be1": jnp.zeros((1, E), jnp.float32),
        "w1": s * jax.random.normal(ks[5], (E, F), jnp.float32),
        "bf1": s * jax.random.normal(ks[6], (1, F), jnp.float32),
        "w2": s * jax.random.normal(ks[7], (F, E), jnp.float32),
        "bf2": jnp.zeros((1, E), jnp.float32),
        "g2": jnp.ones((1, E), jnp.float32),
        "be2": jnp.zeros((1, E), jnp.float32),
    }


if __name__ == "__main__":
    key = jax.random.PRNGKey(0)
    kx, kp = jax.random.split(key)
    x = jax.random.normal(kx, (B, S, E), jnp.float32)
    params = make_params(kp)

    mm_dtype = default_matmul_dtype()
    prepped = prepare_params(params, compute_dtype=mm_dtype)

    out = jax.block_until_ready(transformer_encoder_block(x, prepped))
    ref = jax.block_until_ready(reference_forward(x, params))

    # Tight check on the f32 path; looser on the bf16-matmul (v6e/v7x) path.
    tol = 5e-2 if mm_dtype == jnp.bfloat16 else 5e-4
    np.testing.assert_allclose(np.asarray(out), np.asarray(ref), rtol=tol, atol=tol)

    print("KERNEL_OK")
</pallas_src>

<mosaic_0001>
module attributes {stable_mosaic.version = 11 : i64} {
  func.func @encoder_block_kernel(%arg0: i32, %arg1: memref<16x32xf32, #tpu.memory_space<vmem>>, %arg2: memref<32x256xf32, #tpu.memory_space<vmem>>, %arg3: memref<8x128xf32, #tpu.memory_space<vmem>>, %arg4: memref<16x32xf32, #tpu.memory_space<vmem>>) attributes {dimension_semantics = [#tpu.dimension_semantics<arbitrary>], iteration_bounds = array<i64: 1>, scalar_prefetch = 0 : i64, scratch_operands = 0 : i64, tpu.core_type = #tpu.core_type<tc>, window_params = [{pipeline_mode = #tpu.pipeline_mode<synchronous>, transform_indices = @transform_0, window_bounds = array<i64: 16, 32>}, {pipeline_mode = #tpu.pipeline_mode<synchronous>, transform_indices = @transform_1, window_bounds = array<i64: 32, 256>}, {pipeline_mode = #tpu.pipeline_mode<synchronous>, transform_indices = @transform_2, window_bounds = array<i64: 8, 128>}, {pipeline_mode = #tpu.pipeline_mode<synchronous>, transform_indices = @transform_3, window_bounds = array<i64: 16, 32>}]} {
    %c0 = arith.constant 0 : index
    %c0_0 = arith.constant 0 : index
    %0 = vector.load %arg1[%c0, %c0_0] : memref<16x32xf32, #tpu.memory_space<vmem>>, vector<16x32xf32>
    %c0_1 = arith.constant 0 : index
    %c0_2 = arith.constant 0 : index
    %1 = vector.load %arg2[%c0_1, %c0_2] : memref<32x256xf32, #tpu.memory_space<vmem>>, vector<32x256xf32>
    %c0_3 = arith.constant 0 : index
    %c0_4 = arith.constant 0 : index
    %2 = vector.load %arg3[%c0_3, %c0_4] : memref<8x128xf32, #tpu.memory_space<vmem>>, vector<8x128xf32>
    %3 = vector.extract_strided_slice %1 {offsets = [0, 0], sizes = [32, 96], strides = [1, 1]} : vector<32x256xf32> to vector<32x96xf32>
    %4 = vector.extract_strided_slice %1 {offsets = [0, 96], sizes = [32, 32], strides = [1, 1]} : vector<32x256xf32> to vector<32x32xf32>
    %5 = vector.extract_strided_slice %1 {offsets = [0, 128], sizes = [32, 64], strides = [1, 1]} : vector<32x256xf32> to vector<32x64xf32>
    %6 = vector.extract_strided_slice %1 {offsets = [0, 192], sizes = [32, 64], strides = [1, 1]} : vector<32x256xf32> to vector<32x64xf32>
    %7 = vector.extract_strided_slice %2 {offsets = [0, 0], sizes = [1, 96], strides = [1, 1]} : vector<8x128xf32> to vector<1x96xf32>
    %8 = vector.extract_strided_slice %2 {offsets = [1, 0], sizes = [1, 32], strides = [1, 1]} : vector<8x128xf32> to vector<1x32xf32>
    %9 = vector.extract_strided_slice %2 {offsets = [2, 0], sizes = [1, 32], strides = [1, 1]} : vector<8x128xf32> to vector<1x32xf32>
    %10 = vector.extract_strided_slice %2 {offsets = [3, 0], sizes = [1, 32], strides = [1, 1]} : vector<8x128xf32> to vector<1x32xf32>
    %11 = vector.extract_strided_slice %2 {offsets = [4, 0], sizes = [1, 64], strides = [1, 1]} : vector<8x128xf32> to vector<1x64xf32>
    %12 = vector.extract_strided_slice %2 {offsets = [5, 0], sizes = [1, 32], strides = [1, 1]} : vector<8x128xf32> to vector<1x32xf32>
    %13 = vector.extract_strided_slice %2 {offsets = [6, 0], sizes = [1, 32], strides = [1, 1]} : vector<8x128xf32> to vector<1x32xf32>
    %14 = vector.extract_strided_slice %2 {offsets = [7, 0], sizes = [1, 32], strides = [1, 1]} : vector<8x128xf32> to vector<1x32xf32>
    %cst = arith.constant dense<0.000000e+00> : vector<16x96xf32>
    %15 = tpu.matmul %0, %3, %cst {dimension_numbers = #tpu.dot_dimension_numbers<[1], [0], [0], [1], [0, 0, 1, 1], [], []>} : vector<16x32xf32>, vector<32x96xf32>, vector<16x96xf32> -> vector<16x96xf32>
    %16 = vector.broadcast %7 : vector<1x96xf32> to vector<16x96xf32>
    %17 = arith.addf %15, %16 : vector<16x96xf32>
    %18 = vector.extract_strided_slice %17 {offsets = [0, 0], sizes = [16, 24], strides = [1, 1]} : vector<16x96xf32> to vector<16x24xf32>
    %19 = vector.extract_strided_slice %17 {offsets = [0, 24], sizes = [16, 24], strides = [1, 1]} : vector<16x96xf32> to vector<16x24xf32>
    %20 = vector.extract_strided_slice %17 {offsets = [0, 48], sizes = [16, 24], strides = [1, 1]} : vector<16x96xf32> to vector<16x24xf32>
    %21 = vector.extract_strided_slice %17 {offsets = [0, 72], sizes = [16, 24], strides = [1, 1]} : vector<16x96xf32> to vector<16x24xf32>
    %22 = vector.shape_cast %18 : vector<16x24xf32> to vector<1x16x24xf32>
    %23 = vector.shape_cast %19 : vector<16x24xf32> to vector<1x16x24xf32>
    %24 = vector.shape_cast %20 : vector<16x24xf32> to vector<1x16x24xf32>
    %25 = vector.shape_cast %21 : vector<16x24xf32> to vector<1x16x24xf32>
    %26 = tpu.concatenate %22, %23, %24, %25 in 0 : vector<1x16x24xf32>, vector<1x16x24xf32>, vector<1x16x24xf32>, vector<1x16x24xf32> -> vector<4x16x24xf32>
    %27 = vector.extract_strided_slice %26 {offsets = [0, 0, 0], sizes = [4, 16, 8], strides = [1, 1, 1]} : vector<4x16x24xf32> to vector<4x16x8xf32>
    %28 = vector.extract_strided_slice %26 {offsets = [0, 0, 8], sizes = [4, 16, 8], strides = [1, 1, 1]} : vector<4x16x24xf32> to vector<4x16x8xf32>
    %29 = vector.extract_strided_slice %26 {offsets = [0, 0, 16], sizes = [4, 16, 8], strides = [1, 1, 1]} : vector<4x16x24xf32> to vector<4x16x8xf32>
    "tpu.trace_start"() <{level = 10 : i32, message = "hmd,hnd->hmn"}> : () -> ()
    %cst_5 = arith.constant dense<0.000000e+00> : vector<4x16x16xf32>
    %30 = tpu.matmul %27, %28, %cst_5 {dimension_numbers = #tpu.dot_dimension_numbers<[2], [2], [1], [1], [0, 0, 0, 1, 1, 1], [0], [0]>} : vector<4x16x8xf32>, vector<4x16x8xf32>, vector<4x16x16xf32> -> vector<4x16x16xf32>
    %cst_6 = arith.constant 0.000000e+00 : f32
    "tpu.trace_stop"() : () -> ()
    %31 = vector.broadcast %cst_6 : f32 to vector<8x8xf32>
    %cst_7 = arith.constant -1.000000e+30 : f32
    %32 = vector.broadcast %cst_7 : f32 to vector<8x8xf32>
    %33 = tpu.concatenate %31, %32 in 1 : vector<8x8xf32>, vector<8x8xf32> -> vector<8x16xf32>
    %34 = tpu.concatenate %32, %31 in 1 : vector<8x8xf32>, vector<8x8xf32> -> vector<8x16xf32>
    %35 = tpu.concatenate %33, %34 in 0 : vector<8x16xf32>, vector<8x16xf32> -> vector<16x16xf32>
    %36 = vector.shape_cast %35 : vector<16x16xf32> to vector<1x16x16xf32>
    %37 = vector.broadcast %36 : vector<1x16x16xf32> to vector<4x16x16xf32>
    %38 = arith.addf %30, %37 : vector<4x16x16xf32>
    %cst_8 = arith.constant dense<0xFF800000> : vector<4x16xf32>
    %39 = vector.multi_reduction <maximumf>, %38, %cst_8 [2] : vector<4x16x16xf32> to vector<4x16xf32>
    %40 = vector.shape_cast %39 : vector<4x16xf32> to vector<4x16x1xf32>
    %41 = vector.broadcast %40 : vector<4x16x1xf32> to vector<4x16x16xf32>
    %42 = arith.subf %38, %41 : vector<4x16x16xf32>
    %43 = math.exp %42 : vector<4x16x16xf32>
    %cst_9 = arith.constant dense<0.000000e+00> : vector<4x16xf32>
    %44 = vector.multi_reduction <add>, %43, %cst_9 [2] : vector<4x16x16xf32> to vector<4x16xf32>
    %45 = vector.shape_cast %44 : vector<4x16xf32> to vector<4x16x1xf32>
    %46 = tpu.reciprocal %45 : vector<4x16x1xf32> -> vector<4x16x1xf32>
    %47 = vector.broadcast %46 : vector<4x16x1xf32> to vector<4x16x16xf32>
    %48 = arith.mulf %43, %47 : vector<4x16x16xf32>
    "tpu.trace_start"() <{level = 10 : i32, message = "hmn,hnd->hmd"}> : () -> ()
    %cst_10 = arith.constant dense<0.000000e+00> : vector<4x16x8xf32>
    %49 = tpu.matmul %48, %29, %cst_10 {dimension_numbers = #tpu.dot_dimension_numbers<[2], [1], [1], [2], [0, 0, 0, 1, 1, 2], [0], [0]>} : vector<4x16x16xf32>, vector<4x16x8xf32>, vector<4x16x8xf32> -> vector<4x16x8xf32>
    "tpu.trace_stop"() : () -> ()
    %50 = vector.extract_strided_slice %49 {offsets = [0, 0, 0], sizes = [1, 16, 8], strides = [1, 1, 1]} : vector<4x16x8xf32> to vector<1x16x8xf32>
    %51 = vector.shape_cast %50 : vector<1x16x8xf32> to vector<16x8xf32>
    %52 = vector.extract_strided_slice %49 {offsets = [1, 0, 0], sizes = [1, 16, 8], strides = [1, 1, 1]} : vector<4x16x8xf32> to vector<1x16x8xf32>
    %53 = vector.shape_cast %52 : vector<1x16x8xf32> to vector<16x8xf32>
    %54 = vector.extract_strided_slice %49 {offsets = [2, 0, 0], sizes = [1, 16, 8], strides = [1, 1, 1]} : vector<4x16x8xf32> to vector<1x16x8xf32>
    %55 = vector.shape_cast %54 : vector<1x16x8xf32> to vector<16x8xf32>
    %56 = vector.extract_strided_slice %49 {offsets = [3, 0, 0], sizes = [1, 16, 8], strides = [1, 1, 1]} : vector<4x16x8xf32> to vector<1x16x8xf32>
    %57 = vector.shape_cast %56 : vector<1x16x8xf32> to vector<16x8xf32>
    %58 = tpu.concatenate %51, %53, %55, %57 in 1 : vector<16x8xf32>, vector<16x8xf32>, vector<16x8xf32>, vector<16x8xf32> -> vector<16x32xf32>
    %cst_11 = arith.constant dense<0.000000e+00> : vector<16x32xf32>
    %59 = tpu.matmul %58, %4, %cst_11 {dimension_numbers = #tpu.dot_dimension_numbers<[1], [0], [0], [1], [0, 0, 1, 1], [], []>} : vector<16x32xf32>, vector<32x32xf32>, vector<16x32xf32> -> vector<16x32xf32>
    %60 = vector.broadcast %8 : vector<1x32xf32> to vector<16x32xf32>
    %61 = arith.addf %59, %60 : vector<16x32xf32>
    %62 = arith.addf %0, %61 : vector<16x32xf32>
    %cst_12 = arith.constant dense<0.000000e+00> : vector<16xf32>
    %63 = vector.multi_reduction <add>, %62, %cst_12 [1] : vector<16x32xf32> to vector<16xf32>
    %64 = vector.shape_cast %63 : vector<16xf32> to vector<16x1xf32>
    %cst_13 = arith.constant 3.200000e+01 : f32
    %65 = vector.broadcast %cst_13 : f32 to vector<16x1xf32>
    %66 = arith.divf %64, %65 : vector<16x1xf32>
    %67 = arith.mulf %62, %62 : vector<16x32xf32>
    %cst_14 = arith.constant dense<0.000000e+00> : vector<16xf32>
    %68 = vector.multi_reduction <add>, %67, %cst_14 [1] : vector<16x32xf32> to vector<16xf32>
    %69 = vector.shape_cast %68 : vector<16xf32> to vector<16x1xf32>
    %cst_15 = arith.constant 3.200000e+01 : f32
    %70 = vector.broadcast %cst_15 : f32 to vector<16x1xf32>
    %71 = arith.divf %69, %70 : vector<16x1xf32>
    %72 = arith.mulf %66, %66 : vector<16x1xf32>
    %73 = arith.subf %71, %72 : vector<16x1xf32>
    %cst_16 = arith.constant 9.99999974E-6 : f32
    %74 = vector.broadcast %cst_16 : f32 to vector<16x1xf32>
    %75 = arith.addf %73, %74 : vector<16x1xf32>
    %76 = math.rsqrt %75 : vector<16x1xf32>
    %77 = vector.broadcast %66 : vector<16x1xf32> to vector<16x32xf32>
    %78 = arith.subf %62, %77 : vector<16x32xf32>
    %79 = vector.broadcast %76 : vector<16x1xf32> to vector<16x32xf32>
    %80 = arith.mulf %78, %79 : vector<16x32xf32>
    %81 = vector.broadcast %9 : vector<1x32xf32> to vector<16x32xf32>
    %82 = arith.mulf %80, %81 : vector<16x32xf32>
    %83 = vector.broadcast %10 : vector<1x32xf32> to vector<16x32xf32>
    %84 = arith.addf %82, %83 : vector<16x32xf32>
    %cst_17 = arith.constant dense<0.000000e+00> : vector<16x64xf32>
    %85 = tpu.matmul %84, %5, %cst_17 {dimension_numbers = #tpu.dot_dimension_numbers<[1], [0], [0], [1], [0, 0, 1, 1], [], []>} : vector<16x32xf32>, vector<32x64xf32>, vector<16x64xf32> -> vector<16x64xf32>
    %86 = vector.broadcast %11 : vector<1x64xf32> to vector<16x64xf32>
    %87 = arith.addf %85, %86 : vector<16x64xf32>
    %cst_18 = arith.constant 0.000000e+00 : f32
    %88 = vector.broadcast %cst_18 : f32 to vector<16x64xf32>
    %89 = arith.maximumf %87, %88 : vector<16x64xf32>
    %cst_19 = arith.constant dense<0.000000e+00> : vector<16x32xf32>
    %90 = tpu.matmul %89, %6, %cst_19 {dimension_numbers = #tpu.dot_dimension_numbers<[1], [1], [0], [0], [0, 0, 1, 0], [], []>} : vector<16x64xf32>, vector<32x64xf32>, vector<16x32xf32> -> vector<16x32xf32>
    %91 = vector.broadcast %12 : vector<1x32xf32> to vector<16x32xf32>
    %92 = arith.addf %90, %91 : vector<16x32xf32>
    %93 = arith.addf %84, %92 : vector<16x32xf32>
    %cst_20 = arith.constant dense<0.000000e+00> : vector<16xf32>
    %94 = vector.multi_reduction <add>, %93, %cst_20 [1] : vector<16x32xf32> to vector<16xf32>
    %95 = vector.shape_cast %94 : vector<16xf32> to vector<16x1xf32>
    %cst_21 = arith.constant 3.200000e+01 : f32
    %96 = vector.broadcast %cst_21 : f32 to vector<16x1xf32>
    %97 = arith.divf %95, %96 : vector<16x1xf32>
    %98 = arith.mulf %93, %93 : vector<16x32xf32>
    %cst_22 = arith.constant dense<0.000000e+00> : vector<16xf32>
    %99 = vector.multi_reduction <add>, %98, %cst_22 [1] : vector<16x32xf32> to vector<16xf32>
    %100 = vector.shape_cast %99 : vector<16xf32> to vector<16x1xf32>
    %cst_23 = arith.constant 3.200000e+01 : f32
    %101 = vector.broadcast %cst_23 : f32 to vector<16x1xf32>
    %102 = arith.divf %100, %101 : vector<16x1xf32>
    %103 = arith.mulf %97, %97 : vector<16x1xf32>
    %104 = arith.subf %102, %103 : vector<16x1xf32>
    %cst_24 = arith.constant 9.99999974E-6 : f32
    %105 = vector.broadcast %cst_24 : f32 to vector<16x1xf32>
    %106 = arith.addf %104, %105 : vector<16x1xf32>
    %107 = math.rsqrt %106 : vector<16x1xf32>
    %108 = vector.broadcast %97 : vector<16x1xf32> to vector<16x32xf32>
    %109 = arith.subf %93, %108 : vector<16x32xf32>
    %110 = vector.broadcast %107 : vector<16x1xf32> to vector<16x32xf32>
    %111 = arith.mulf %109, %110 : vector<16x32xf32>
    %112 = vector.broadcast %13 : vector<1x32xf32> to vector<16x32xf32>
    %113 = arith.mulf %111, %112 : vector<16x32xf32>
    %114 = vector.broadcast %14 : vector<1x32xf32> to vector<16x32xf32>
    %115 = arith.addf %113, %114 : vector<16x32xf32>
    %c0_25 = arith.constant 0 : index
    %c0_26 = arith.constant 0 : index
    %116 = vector.load %arg4[%c0_25, %c0_26] : memref<16x32xf32, #tpu.memory_space<vmem>>, vector<16x32xf32>
    tpu.vector_store %arg4[%c0_25, %c0_26], %115 {strides = array<i32>} : memref<16x32xf32, #tpu.memory_space<vmem>>, vector<16x32xf32>,
    return
  }
  func.func @transform_0(%arg0: i32) -> (i32, i32) {
    %c0_i32 = arith.constant 0 : i32
    %c0_i32_0 = arith.constant 0 : i32
    %c0_i32_1 = arith.constant 0 : i32
    return %c0_i32, %c0_i32_0 : i32, i32
  }
  func.func @transform_1(%arg0: i32) -> (i32, i32) {
    %c0_i32 = arith.constant 0 : i32
    %c0_i32_0 = arith.constant 0 : i32
    %c0_i32_1 = arith.constant 0 : i32
    return %c0_i32, %c0_i32_0 : i32, i32
  }
  func.func @transform_2(%arg0: i32) -> (i32, i32) {
    %c0_i32 = arith.constant 0 : i32
    %c0_i32_0 = arith.constant 0 : i32
    %c0_i32_1 = arith.constant 0 : i32
    return %c0_i32, %c0_i32_0 : i32, i32
  }
  func.func @transform_3(%arg0: i32) -> (i32, i32) {
    %c0_i32 = arith.constant 0 : i32
    %c0_i32_0 = arith.constant 0 : i32
    %c0_i32_1 = arith.constant 0 : i32
    return %c0_i32, %c0_i32_0 : i32, i32
  }
}

</mosaic_0001>

<bundles_post_ra>
// kernel: tpu_custom_call.1
= control target key start
LH: loop header
LB: loop body
LE: loop exit
PB: predicated region body
PF: predicated region fallthrough
CT: control target
= control target key end

     0   :  { %8 = vsyncpa [#allocation3], 0  ;;  %s1502_s0 = inlined_call_operand.hbm [shape: f32[16,32], index: 0, kind: input, shape index: {}]   ;;  %s1503_s1 = inlined_call_operand.hbm [shape: f32[32,256], index: 1, kind: input, shape index: {}]   ;;  %s1504_s2 = inlined_call_operand.hbm [shape: f32[8,128], index: 2, kind: input, shape index: {}]   ;;  %s1505_s3 = inlined_call_operand.hbm [shape: f32[16,32], index: 3, kind: output, shape index: {}]  }
   0x1   :  { %9 = vsyncpa [#allocation6], 0  ;;  %s28_s14 = sshll.u32 %s1503_s1, 4  ;;  %s29_s14 = int_to_ptr.hbm [resolvable:$true] %s28_s14 }
   0x2   :  { %10 = vsyncpa [#allocation4], 0  ;;  %s1123_s15 = smov [#allocation5]   ;;  %s15_s19 = sshll.u32 %s1502_s0, 4  ;;  %s16_s19 = int_to_ptr.hbm [resolvable:$true] %s15_s19 }
   0x3   :  { %s30_s16 = sshll.u32 %s1123_s15, 4  ;;  %s1124_s20 = smov 256   ;;  %s31_s16 = int_to_ptr.vmem [resolvable:$true] %s30_s16 }
   0x4   :  { %s1125_s21 = smov 16   ;;  %s1126_s22 = smov [#allocation2]  }
   0x5   :  { %36 = dma.hbm_to_vmem [thread:$0]  %s29_s14, 1024, %s31_s16, [#allocation6], %s1124_s20, %s1124_s20, %s1125_s21  }
   0x6   :  { %s17_s23 = sshll.u32 %s1126_s22, 4  ;;  %s1127_s24 = smov 128   ;;  %s18_s23 = int_to_ptr.vmem [resolvable:$true] %s17_s23 }
   0x7   :  { %s1128_s25 = smov 8   ;;  %s42_s27 = sshll.u32 %s1504_s2, 4  ;;  %s43_s27 = int_to_ptr.hbm [resolvable:$true] %s42_s27 }
   0x8   :  { %23 = dma.hbm_to_vmem [thread:$0]  %s16_s19, 256, %s18_s23, [#allocation3], %s1127_s24, %s1127_s24, %s1128_s25  }
   0x9   :  { %s1129_s0 = smov [#allocation7]  }
   0xa   :  { %s44_s28 = sshll.u32 %s1129_s0, 4  ;;  %s45_s28 = int_to_ptr.vmem [resolvable:$true] %s44_s28 }
   0xb   :  { %47 = dma.hbm_to_vmem [thread:$0]  %s43_s27, 128, %s45_s28, [#allocation6]  }
   0xc   :  { %1117 = dma.done.wait [#allocation3], 256  }
   0xd   :  { %1118 = vsyncadd [#allocation3], 4294967040 }
   0xe   :  { %1119 = dma.done.wait [#allocation6], 1152  }
   0xf   :  { %1120 = vsyncadd [#allocation6], 4294966144  ;;  %v1175_v0 = vld [vmem:[#allocation5 + $0x30] sm:$0xff]  ;;  %v1177_v1 = vld [vmem:[#allocation5 + $0x20] sm:$0xff]  ;;  %vm72_vm0 = vcmask 261120   ;;  %s1130_s2 = smov 104  }
  0x10   :  { %91 = vmatpush.msra.mxu0 %v1175_v0  ;;  %v968_v2 = vpack.i.bf16 %v1177_v1, %v1175_v0  ;;  %v1182_v3 = vld [vmem:[#allocation5 + $0x10] sm:$0xff]  ;;  %v1184_v4 = vld [vmem:[#allocation5] sm:$0xff]  ;;  %v1195_v7 = vld [vmem:[#allocation2 + $0x8] sm:$0xff]  ;;  %s1131_s29 = smov 56   ;;  %s1132_s30 = smov 80   ;;  %vm116_vm1 = vcmask 64512  }
  0x11   :  { %v973_v5 = vpack.i.bf16 %v1184_v4, %v1182_v3  ;;  %v1190_v6 = vld [vmem:[#allocation2] sm:$0xff]  ;;  %v1199_v8 = vld [vmem:[#allocation7] sm:$0xff]  ;;  %s1133_s4 = smov 120   ;;  %v1134_v28 = vmov -1e+30   ;;  %vm259_vm2 = vcmask 130048  }
  0x12   :  { %92 = vmatpush.msra.mxu0 %v1177_v1  ;;  %v71_v9 = vperm.slane %v1199_v8, 0  ;;  %v117_v29 = vsel %vm116_vm1, 0.0, %v1134_v28  ;;  %v1135_v33 = vmov 0.0   ;;  %s1136_s5 = smov 112   ;;  %s1137_s6 = smov 32  }
  0x13   :  { %v118_v34 = vsel %vm116_vm1, -1e+30, %v1135_v33  ;;  %s1138_s7 = smov 24   ;;  %s1140_s8 = smov 64  }
  0x14   :  { %93 = vmatpush.msra.mxu0 %v1182_v3  ;;  %s1141_s9 = smov [#allocation8]   ;;  %s879_s13 = sshll.u32 %s1505_s3, 4  ;;  %s880_s13 = int_to_ptr.hbm [resolvable:$true] %s879_s13 }
  0x15   :  { %s877_s10 = sshll.u32 %s1141_s9, 4  ;;  %s878_s10 = int_to_ptr.vmem [resolvable:$true] %s877_s10 }
  0x16   :  { %94 = vmatpush.msra.mxu0 %v1184_v4 }
  0x17   :  { %893 = vmatmul.msk.f32.vlgmr.msra.gmra.mxu0 %vm72_vm0, %v1190_v6 }
  0x1f   :  { %894 = vmatmul.msk.f32.gmra.mxu0 %vm72_vm0, %v1195_v7 }
  0x94   :  { %v96_v10 = vpop.f32.mrf.mxu0 }
  0x95   :  { %v1202_v11 = vadd.f32 %v96_v10, %v71_v9 }
  0x97   :  { %104 = vrot.lane.b32.xlu1 %v1202_v11, %s1130_s2 }
  0x9c   :  { %v99_v12 = vpop.f32.mrf.mxu0 }
  0x9d   :  { %v1205_v13 = vadd.f32 %v99_v12, %v71_v9 }
  0x9f   :  { %114 = vrot.lane.b32.xlu2 %v1205_v13, %s1131_s29  ;;  %106 = vrot.lane.b32.xlu0 %v1205_v13, %s1130_s2 }
  0xa0   :  { %108 = vrot.lane.b32.xlu1 %v1202_v11, %s1132_s30 }
  0xa7   :  { %110 = vrot.lane.b32.xlu0 %v1205_v13, %s1132_s30  ;;  %112 = vrot.lane.b32.xlu2 %v1202_v11, %s1131_s29 }
  0xf9   :  { %v1212_v14 = vpop.permute.xlu2 %114 }
 0x101   :  { %v1217_v16 = vpop.permute.xlu2 %112 }
 0x109   :  { %v1214_v15 = vpop.permute.xlu1 %104 }
 0x10a   :  { %154 = vrot.lane.b32.xlu2 %v1214_v15, %s1133_s4 }
 0x111   :  { %v1219_v17 = vpop.permute.xlu0 %106 }
 0x112   :  { %156 = vrot.lane.b32.xlu0 %v1219_v17, %s1133_s4  ;;  %224 = vrot.lane.b32.xlu2 %v1217_v16, %s1133_s4  ;;  %v1223_v18 = vpop.permute.xlu1 %108 }
 0x119   :  { %v1225_v19 = vpop.permute.xlu0 %110 }
 0x11a   :  { %191 = vrot.lane.b32.xlu1 %v1225_v19, %s1133_s4  ;;  %189 = vrot.lane.b32.xlu0 %v1223_v18, %s1133_s4 }
 0x122   :  { %226 = vrot.lane.b32.xlu1 %v1212_v14, %s1133_s4  ;;  %121 = vrot.lane.b32.xlu0 %v1205_v13, %s1133_s4 }
 0x12a   :  { %119 = vrot.lane.b32.xlu1 %v1202_v11, %s1133_s4 }
 0x164   :  { %v155_v21 = vpop.permute.xlu2 %154 }
 0x16c   :  { %v225_v26 = vpop.permute.xlu2 %224 }
 0x184   :  { %v157_v20 = vpop.permute.xlu0 %156 }
 0x185   :  { %899 = vmatpush.xpose.msk.msra.mxu2 %vm116_vm1, %v157_v20 }
 0x189   :  { %900 = vmatpush.xpose.msk.msra.mxu2 %vm116_vm1, %v155_v21 }
 0x18c   :  { %901 = vmatmul.msk.f32.vlgmr.msra.gmra.mxu2 %vm116_vm1, %v1214_v15  ;;  %v190_v22 = vpop.permute.xlu0 %189  ;;  %v192_v23 = vpop.permute.xlu1 %191 }
 0x18d   :  { %903 = vmatpush.xpose.msk.msra.mxu3 %vm116_vm1, %v192_v23 }
 0x191   :  { %904 = vmatpush.xpose.msk.msra.mxu3 %vm116_vm1, %v190_v22 }
 0x194   :  { %902 = vmatmul.msk.f32.gmra.mxu2 %vm116_vm1, %v1219_v17  ;;  %v122_v24 = vpop.permute.xlu0 %121  ;;  %905 = vmatmul.msk.f32.vlgmr.msra.gmra.mxu3 %vm116_vm1, %v1223_v18  ;;  %v227_v25 = vpop.permute.xlu1 %226 }
 0x195   :  { %895 = vmatpush.xpose.msk.msra.mxu1 %vm116_vm1, %v122_v24  ;;  %907 = vmatpush.xpose.msk.msrb.mxu0 %vm116_vm1, %v227_v25 }
 0x199   :  { %908 = vmatpush.xpose.msk.msrb.mxu0 %vm116_vm1, %v225_v26 }
 0x19c   :  { %906 = vmatmul.msk.f32.gmra.mxu3 %vm116_vm1, %v1225_v19  ;;  %909 = vmatmul.msk.f32.vlgmr.msrb.gmra.mxu0 %vm116_vm1, %v1217_v16  ;;  %v120_v27 = vpop.permute.xlu1 %119 }
 0x19d   :  { %896 = vmatpush.xpose.msk.msra.mxu1 %vm116_vm1, %v120_v27 }
 0x1a0   :  { %897 = vmatmul.msk.f32.vlgmr.msra.gmra.mxu1 %vm116_vm1, %v1202_v11 }
 0x1a4   :  { %910 = vmatmul.msk.f32.gmra.mxu0 %vm116_vm1, %v1212_v14 }
 0x1a8   :  { %898 = vmatmul.msk.f32.gmra.mxu1 %vm116_vm1, %v1205_v13 }
 0x20f   :  { %v183_v30 = vpop.f32.mrf.mxu2 }
 0x210   :  { %v184_v31 = vadd.f32 %v183_v30, %v117_v29 }
 0x212   :  { %v266_v32 = vsel %vm259_vm2, %v184_v31, -inf }
 0x213   :  { %267 = vmax.xlane.f32.xlu2 %v266_v32 }
 0x217   :  { %v186_v35 = vpop.f32.mrf.mxu2  ;;  %v218_v36 = vpop.f32.mrf.mxu3 }
 0x218   :  { %v187_v37 = vadd.f32 %v186_v35, %v118_v34  ;;  %v219_v38 = vadd.f32 %v218_v36, %v117_v29 }
 0x219   :  { %v253_v39 = vpop.f32.mrf.mxu0 }
 0x21a   :  { %v254_v40 = vadd.f32 %v253_v39, %v117_v29  ;;  %v269_v41 = vsel %vm259_vm2, %v187_v37, -inf  ;;  %v272_v42 = vsel %vm259_vm2, %v219_v38, -inf  ;;  %v948_v39 = vpack.i.bf16 %v1225_v19, %v1219_v17 }
 0x21b   :  { %270 = vmax.xlane.f32.xlu1 %v269_v41  ;;  %273 = vmax.xlane.f32.xlu0 %v272_v42  ;;  %v958_v41 = vpack.i.bf16 %v1217_v16, %v1212_v14 }
 0x21c   :  { %v278_v43 = vsel %vm259_vm2, %v254_v40, -inf }
 0x21d   :  { %279 = vmax.xlane.f32.xlu2 %v278_v43  ;;  %v148_v44 = vpop.f32.mrf.mxu1 }
 0x21e   :  { %v1262_v45 = vadd.f32 %v148_v44, %v117_v29  ;;  %v963_v44 = vpack.i.bf16 %v1202_v11, %v1205_v13 }
 0x21f   :  { %v221_v46 = vpop.f32.mrf.mxu3 }
 0x220   :  { %v222_v47 = vadd.f32 %v221_v46, %v118_v34  ;;  %v260_v50 = vsel %vm259_vm2, %v1262_v45, -inf }
 0x221   :  { %v256_v48 = vpop.f32.mrf.mxu0 }
 0x222   :  { %v257_v49 = vadd.f32 %v256_v48, %v118_v34  ;;  %v275_v52 = vsel %vm259_vm2, %v222_v47, -inf }
 0x223   :  { %261 = vmax.xlane.f32.xlu1 %v260_v50 }
 0x224   :  { %v281_v51 = vsel %vm259_vm2, %v257_v49, -inf }
 0x225   :  { %282 = vmax.xlane.f32.xlu0 %v281_v51  ;;  %276 = vmax.xlane.f32.xlu2 %v275_v52  ;;  %v151_v53 = vpop.f32.mrf.mxu1 }
 0x226   :  { %v152_v54 = vadd.f32 %v151_v53, %v118_v34 }
 0x228   :  { %v263_v55 = vsel %vm259_vm2, %v152_v54, -inf }
 0x22d   :  { %264 = vmax.xlane.f32.xlu0 %v263_v55 }
 0x286   :  { %v268_v56 = vpop.xlane.xlu2 %267 }
 0x287   :  { %v286_v57 = vsub.f32 %v184_v31, %v268_v56 }
 0x289   :  { %v296_v58 = vmul.f32 1.442695, %v286_v57 }
 0x28b   :  { %978 = vpow2.f32 %v296_v58 }
 0x28e   :  { %v274_v59 = vpop.xlane.xlu0 %273  ;;  %v271_v20 = vpop.xlane.xlu1 %270 }
 0x28f   :  { %v288_v60 = vsub.f32 %v219_v38, %v274_v59  ;;  %v287_v28 = vsub.f32 %v187_v37, %v271_v20 }
 0x290   :  { %v280_v61 = vpop.xlane.xlu2 %279 }
 0x291   :  { %v1269_v62 = vpop.eup %978  ;;  %v300_v63 = vmul.f32 1.442695, %v288_v60  ;;  %v290_v9 = vsub.f32 %v254_v40, %v280_v61  ;;  %v298_v32 = vmul.f32 1.442695, %v287_v28  ;;  %v953_v40 = vpack.i.bf16 %v1223_v18, %v1214_v15 }
 0x292   :  { %v314_v10 = vsel %vm259_vm2, %v1269_v62, 0.0 }
 0x293   :  { %980 = vpow2.f32 %v300_v63  ;;  %v304_v12 = vmul.f32 1.442695, %v290_v9  ;;  %315 = vadd.xlane.f32.xlu2 %v314_v10 }
 0x295   :  { %982 = vpow2.f32 %v304_v12 }
 0x296   :  { %v262_v42 = vpop.xlane.xlu1 %261 }
 0x297   :  { %v284_v43 = vsub.f32 %v1262_v45, %v262_v42 }
 0x298   :  { %v283_v21 = vpop.xlane.xlu0 %282  ;;  %v277_v22 = vpop.xlane.xlu2 %276 }
 0x299   :  { %v1273_v23 = vpop.eup %980  ;;  %v291_v24 = vsub.f32 %v257_v49, %v283_v21  ;;  %v289_v25 = vsub.f32 %v222_v47, %v277_v22  ;;  %v292_v46 = vmul.f32 1.442695, %v284_v43 }
 0x29a   :  { %v320_v26 = vsel %vm259_vm2, %v1273_v23, 0.0 }
 0x29b   :  { %v1277_v27 = vpop.eup %982  ;;  %v306_v29 = vmul.f32 1.442695, %v291_v24  ;;  %v302_v30 = vmul.f32 1.442695, %v289_v25  ;;  %321 = vadd.xlane.f32.xlu1 %v320_v26 }
 0x29c   :  { %v326_v31 = vsel %vm259_vm2, %v1277_v27, 0.0 }
 0x29d   :  { %984 = vpow2.f32 %v306_v29  ;;  %327 = vadd.xlane.f32.xlu0 %v326_v31 }
 0x29e   :  { %986 = vpow2.f32 %v302_v30 }
 0x29f   :  { %988 = vpow2.f32 %v298_v32 }
 0x2a0   :  { %990 = vpow2.f32 %v292_v46  ;;  %v265_v17 = vpop.xlane.xlu0 %264 }
 0x2a1   :  { %v285_v47 = vsub.f32 %v152_v54, %v265_v17 }
 0x2a3   :  { %v1281_v33 = vpop.eup %984  ;;  %v294_v18 = vmul.f32 1.442695, %v285_v47 }
 0x2a4   :  { %v1283_v34 = vpop.eup %986  ;;  %v329_v35 = vsel %vm259_vm2, %v1281_v33, 0.0 }
 0x2a5   :  { %330 = vadd.xlane.f32.xlu2 %v329_v35  ;;  %v323_v36 = vsel %vm259_vm2, %v1283_v34, 0.0  ;;  %v1289_v37 = vpop.eup %988  ;;  %992 = vpow2.f32 %v294_v18 }
 0x2a6   :  { %324 = vadd.xlane.f32.xlu1 %v323_v36  ;;  %v317_v38 = vsel %vm259_vm2, %v1289_v37, 0.0  ;;  %v1302_v19 = vpop.eup %990 }
 0x2a7   :  { %v308_v15 = vsel %vm259_vm2, %v1302_v19, 0.0 }
 0x2ab   :  { %v1306_v14 = vpop.eup %992 }
 0x2ac   :  { %v311_v16 = vsel %vm259_vm2, %v1306_v14, 0.0 }
 0x2ad   :  { %318 = vadd.xlane.f32.xlu2 %v317_v38 }
 0x2b1   :  { %949 = vrot.lane.b32.xlu0 %v948_v39, %s1136_s5 }
 0x2bf   :  { %954 = vrot.lane.b32.xlu1 %v953_v40, %s1136_s5 }
 0x2c5   :  { %959 = vrot.lane.b32.xlu2 %v958_v41, %s1136_s5 }
 0x2cd   :  { %964 = vrot.lane.b32.xlu2 %v963_v44, %s1136_s5 }
 0x2d5   :  { %969 = vrot.lane.b32.xlu2 %v968_v2, %s1137_s6 }
 0x2db   :  { %309 = vadd.xlane.f32.xlu0 %v308_v15 }
 0x2dd   :  { %974 = vrot.lane.b32.xlu2 %v973_v5, %s1137_s6 }
 0x2e9   :  { %312 = vadd.xlane.f32.xlu1 %v311_v16 }
 0x306   :  { %v316_v11 = vpop.xlane.xlu2 %315 }
 0x307   :  { %994 = vrcp.f32 %v316_v11  ;;  %v369_v58 = vand.u32 2147483647, %v316_v11  ;;  %v371_v60 = vand.u32 2147483648, %v316_v11  ;;  %vm365_vm7 = vweird.f32 %v316_v11 }
 0x309   :  { %vm1362_vm9 = vcmp.eq.f32.partialorder %v369_v58, 8.507059e+37  ;;  %v372_v35 = vor.u32 1.1754944e-38, %v371_v60 }
 0x30d   :  { %v1319_v48 = vpop.eup %994 }
 0x30e   :  { %v1316_v45 = vpop.xlane.xlu1 %321  ;;  %v361_v50 = vmul.f32 %v1319_v48, %v316_v11  ;;  %vm366_vm4 = vweird.f32 %v1319_v48 }
 0x30f   :  { %vm1358_vm8 = vmor %vm365_vm7, %vm366_vm4  ;;  %vm393_vm10 = vweird.f32 %v1316_v45  ;;  %v399_v46 = vand.u32 2147483648, %v1316_v45  ;;  %v397_v15 = vand.u32 2147483647, %v1316_v45 }
 0x310   :  { %v328_v13 = vpop.xlane.xlu0 %327  ;;  %v362_v4 = vsub.f32 1.0, %v361_v50 }
 0x311   :  { %996 = vrcp.f32 %v328_v13  ;;  %vm421_vm5 = vweird.f32 %v328_v13  ;;  %v425_v9 = vand.u32 2147483647, %v328_v13  ;;  %v427_v10 = vand.u32 2147483648, %v328_v13 }
 0x312   :  { %998 = vrcp.f32 %v1316_v45  ;;  %v363_v54 = vmul.f32 %v1319_v48, %v362_v4  ;;  %v400_v4 = vor.u32 1.1754944e-38, %v399_v46  ;;  %vm398_vm4 = vcmp.eq.f32.partialorder %v397_v15, 8.507059e+37 }
 0x313   :  { %v428_v36 = vor.u32 1.1754944e-38, %v427_v10  ;;  %vm426_vm11 = vcmp.eq.f32.partialorder %v425_v9, 8.507059e+37 }
 0x314   :  { %v364_v20 = vadd.f32 %v1319_v48, %v363_v54 }
 0x316   :  { %v368_v41 = vsel %vm1358_vm8, %v1319_v48, %v364_v20 }
 0x317   :  { %v997_v49 = vpop.eup %996  ;;  %v373_v11 = vsel %vm1362_vm9, %v372_v35, %v368_v41 }
 0x318   :  { %v417_v51 = vmul.f32 %v997_v49, %v328_v13  ;;  %v1322_v0 = vpop.xlane.xlu2 %330  ;;  %v1327_v2 = vpop.eup %998  ;;  %vm422_vm3 = vweird.f32 %v997_v49 }
 0x319   :  { %1000 = vrcp.f32 %v1322_v0  ;;  %v1325_v1 = vpop.xlane.xlu1 %324  ;;  %v389_v5 = vmul.f32 %v1327_v2, %v1316_v45  ;;  %vm1347_vm6 = vmor %vm421_vm5, %vm422_vm3  ;;  %vm394_vm12 = vweird.f32 %v1327_v2  ;;  %v441_v18 = vand.u32 2147483648, %v1322_v0 }
 0x31a   :  { %v418_v3 = vsub.f32 1.0, %v417_v51  ;;  %1002 = vrcp.f32 %v1325_v1  ;;  %vm1383_vm14 = vmor %vm393_vm10, %vm394_vm12  ;;  %vm435_vm15 = vweird.f32 %v1322_v0  ;;  %v439_v50 = vand.u32 2147483647, %v1322_v0 }
 0x31b   :  { %v390_v59 = vsub.f32 1.0, %v389_v5  ;;  %vm407_vm5 = vweird.f32 %v1325_v1  ;;  %v446_v5 = vmul.f32 %v1269_v62, %v373_v11  ;;  %v411_v20 = vand.u32 2147483647, %v1325_v1 }
 0x31c   :  { %v419_v52 = vmul.f32 %v997_v49, %v418_v3 }
 0x31d   :  { %v391_v25 = vmul.f32 %v1327_v2, %v390_v59 }
 0x31e   :  { %v420_v61 = vadd.f32 %v997_v49, %v419_v52 }
 0x31f   :  { %v1332_v53 = vpop.eup %1000  ;;  %v392_v42 = vadd.f32 %v1327_v2, %v391_v25 }
 0x320   :  { %v431_v55 = vmul.f32 %v1332_v53, %v1322_v0  ;;  %v1337_v56 = vpop.xlane.xlu2 %318  ;;  %v1339_v57 = vpop.eup %1002  ;;  %v424_v28 = vsel %vm1347_vm6, %v997_v49, %v420_v61  ;;  %vm436_vm13 = vweird.f32 %v1332_v53  ;;  %v442_v0 = vor.u32 1.1754944e-38, %v441_v18 }
 0x321   :  { %1004 = vrcp.f32 %v1337_v56  ;;  %v403_v21 = vmul.f32 %v1339_v57, %v1325_v1  ;;  %v429_v43 = vsel %vm426_vm11, %v428_v36, %v424_v28  ;;  %v396_v3 = vsel %vm1383_vm14, %v1327_v2, %v392_v42  ;;  %vm1395_vm3 = vmor %vm435_vm15, %vm436_vm13 }
 0x322   :  { %v432_v63 = vsub.f32 1.0, %v431_v55  ;;  %v450_v49 = vmul.f32 %v1277_v27, %v429_v43  ;;  %v401_v54 = vsel %vm398_vm4, %v400_v4, %v396_v3  ;;  %vm440_vm6 = vcmp.eq.f32.partialorder %v439_v50, 8.507059e+37 }
 0x323   :  { %v950_v12 = vpop.permute.xlu0 %949  ;;  %v404_v38 = vsub.f32 1.0, %v403_v21  ;;  %vm408_vm7 = vweird.f32 %v1339_v57  ;;  %v385_v61 = vand.u32 2147483648, %v1337_v56  ;;  %vm379_vm9 = vweird.f32 %v1337_v56 }
 0x324   :  { %v951_v22 = vunpack.i.l.bf16 %v950_v12  ;;  %v952_v24 = vunpack.i.h.bf16 %v950_v12  ;;  %v433_v29 = vmul.f32 %v1332_v53, %v432_v63  ;;  %v448_v9 = vmul.f32 %v1273_v23, %v401_v54  ;;  %vm1416_vm10 = vmor %vm407_vm5, %vm408_vm7 }
 0x325   :  { %v405_v48 = vmul.f32 %v1339_v57, %v404_v38  ;;  %v383_v10 = vand.u32 2147483647, %v1337_v56  ;;  %vm412_vm13 = vcmp.eq.f32.partialorder %v411_v20, 8.507059e+37  ;;  %v623_v20 = vperm.slane %v1199_v8, 1 }
 0x326   :  { %513 = vmatpush.msrb.mxu2 %v951_v22  ;;  %548 = vmatpush.msrb.mxu3 %v952_v24  ;;  %v434_v47 = vadd.f32 %v1332_v53, %v433_v29 }
 0x327   :  { %v1354_v30 = vpop.eup %1004  ;;  %v406_v2 = vadd.f32 %v1339_v57, %v405_v48  ;;  %vm384_vm12 = vcmp.eq.f32.partialorder %v383_v10, 8.507059e+37 }
 0x328   :  { %v375_v39 = vmul.f32 %v1354_v30, %v1337_v56  ;;  %v960_v40 = vpop.permute.xlu2 %959  ;;  %v438_v27 = vsel %vm1395_vm3, %v1332_v53, %v434_v47  ;;  %vm380_vm8 = vweird.f32 %v1354_v30  ;;  %v413_v53 = vand.u32 2147483648, %v1325_v1 }
 0x329   :  { %v961_v44 = vunpack.i.l.bf16 %v960_v40  ;;  %v962_v16 = vunpack.i.h.bf16 %v960_v40  ;;  %v443_v59 = vsel %vm440_vm6, %v442_v0, %v438_v27  ;;  %vm381_vm11 = vmor %vm379_vm9, %vm380_vm8  ;;  %v410_v56 = vsel %vm1416_vm10, %v1339_v57, %v406_v2 }
 0x32a   :  { %v376_v17 = vsub.f32 1.0, %v375_v39  ;;  %v451_v22 = vmul.f32 %v1281_v33, %v443_v59  ;;  %v414_v24 = vor.u32 1.1754944e-38, %v413_v53  ;;  %v386_v1 = vor.u32 1.1754944e-38, %v385_v61 }
 0x32b   :  { %583 = vmatpush.msra.mxu0 %v961_v44  ;;  %vm620_vm9 = vcmask 195584  }
 0x32c   :  { %v377_v51 = vmul.f32 %v1354_v30, %v376_v17  ;;  %v415_v25 = vsel %vm412_vm13, %v414_v24, %v410_v56 }
 0x32d   :  { %584 = vmatpush.msra.mxu0 %v962_v16  ;;  %v449_v28 = vmul.f32 %v1283_v34, %v415_v25 }
 0x32e   :  { %917 = vmatmul.msk.f32.vlgmr.msra.gmra.mxu0 %vm259_vm2, %v450_v49  ;;  %v378_v60 = vadd.f32 %v1354_v30, %v377_v51 }
 0x330   :  { %v965_v52 = vpop.permute.xlu2 %964  ;;  %v382_v23 = vsel %vm381_vm11, %v1354_v30, %v378_v60 }
 0x331   :  { %v955_v55 = vpop.permute.xlu1 %954  ;;  %v966_v58 = vunpack.i.l.bf16 %v965_v52  ;;  %v967_v21 = vunpack.i.h.bf16 %v965_v52  ;;  %v387_v33 = vsel %vm384_vm12, %v386_v1, %v382_v23 }
 0x332   :  { %v956_v63 = vunpack.i.l.bf16 %v955_v55  ;;  %v957_v62 = vunpack.i.h.bf16 %v955_v55  ;;  %v447_v26 = vmul.f32 %v1289_v37, %v387_v33 }
 0x333   :  { %478 = vmatpush.msrb.mxu1 %v966_v58 }
 0x334   :  { %514 = vmatpush.msrb.mxu2 %v956_v63  ;;  %549 = vmatpush.msrb.mxu3 %v957_v62 }
 0x335   :  { %913 = vmatmul.msk.f32.vlgmr.msrb.gmra.mxu2 %vm259_vm2, %v446_v5  ;;  %915 = vmatmul.msk.f32.vlgmr.msrb.gmra.mxu3 %vm259_vm2, %v448_v9 }
 0x336   :  { %479 = vmatpush.msrb.mxu1 %v967_v21  ;;  %918 = vmatmul.msk.f32.gmra.mxu0 %vm259_vm2, %v451_v22 }
 0x338   :  { %v970_v3 = vpop.permute.xlu2 %969 }
 0x339   :  { %v972_v45 = vunpack.i.h.bf16 %v970_v3 }
 0x33d   :  { %914 = vmatmul.msk.f32.gmra.mxu2 %vm259_vm2, %v447_v26  ;;  %916 = vmatmul.msk.f32.gmra.mxu3 %vm259_vm2, %v449_v28 }
 0x340   :  { %v975_v27 = vpop.permute.xlu2 %974 }
 0x341   :  { %v977_v0 = vunpack.i.h.bf16 %v975_v27  ;;  %v976_v5 = vunpack.i.l.bf16 %v975_v27  ;;  %v726_v27 = vperm.slane %v1199_v8, 2 }
 0x34e   :  { %v310_v29 = vpop.xlane.xlu0 %309 }
 0x34f   :  { %1006 = vrcp.f32 %v310_v29  ;;  %v343_v32 = vand.u32 2147483648, %v310_v29  ;;  %v341_v36 = vand.u32 2147483647, %v310_v29  ;;  %vm337_vm15 = vweird.f32 %v310_v29 }
 0x351   :  { %v344_v37 = vor.u32 1.1754944e-38, %v343_v32  ;;  %vm342_vm4 = vcmp.eq.f32.partialorder %v341_v36, 8.507059e+37 }
 0x355   :  { %v1007_v57 = vpop.eup %1006 }
 0x356   :  { %v333_v30 = vmul.f32 %v1007_v57, %v310_v29  ;;  %vm338_vm14 = vweird.f32 %v1007_v57 }
 0x357   :  { %vm339_vm3 = vmor %vm337_vm15, %vm338_vm14  ;;  %vm777_vm15 = vcmask 523264  }
 0x358   :  { %v334_v31 = vsub.f32 1.0, %v333_v30 }
 0x35a   :  { %v335_v35 = vmul.f32 %v1007_v57, %v334_v31 }
 0x35c   :  { %v336_v38 = vadd.f32 %v1007_v57, %v335_v35  ;;  %v313_v39 = vpop.xlane.xlu1 %312 }
 0x35d   :  { %1008 = vrcp.f32 %v313_v39  ;;  %v357_v46 = vand.u32 2147483648, %v313_v39  ;;  %v355_v47 = vand.u32 2147483647, %v313_v39  ;;  %vm351_vm6 = vweird.f32 %v313_v39 }
 0x35e   :  { %v340_v34 = vsel %vm339_vm3, %v1007_v57, %v336_v38  ;;  %v1139_v57 = vmov 32.0   ;;  %v67_v38 = vld [vmem:[#allocation5 + $0x28] sm:$0xff] }
 0x35f   :  { %v345_v40 = vsel %vm342_vm4, %v344_v37, %v340_v34  ;;  %v358_v18 = vor.u32 1.1754944e-38, %v357_v46  ;;  %vm356_vm8 = vcmp.eq.f32.partialorder %v355_v47, 8.507059e+37  ;;  %1010 = vrcp.f32 %v1139_v57  ;;  %v65_v37 = vld [vmem:[#allocation5 + $0x18] sm:$0xff] }
 0x360   :  { %v444_v41 = vmul.f32 %v1302_v19, %v345_v40 }
 0x362   :  { %911 = vmatmul.msk.f32.vlgmr.msrb.gmra.mxu1 %vm259_vm2, %v444_v41  ;;  %v63_v41 = vld [vmem:[#allocation5 + $0x8] sm:$0xff] }
 0x363   :  { %v1009_v42 = vpop.eup %1008 }
 0x364   :  { %v347_v43 = vmul.f32 %v1009_v42, %v313_v39  ;;  %vm352_vm5 = vweird.f32 %v1009_v42 }
 0x365   :  { %vm353_vm7 = vmor %vm351_vm6, %vm352_vm5  ;;  %v1011_v30 = vpop.eup %1010 }
 0x366   :  { %v348_v44 = vsub.f32 1.0, %v347_v43  ;;  %v678_v31 = vmul.f32 32.0, %v1011_v30 }
 0x368   :  { %v349_v17 = vmul.f32 %v1009_v42, %v348_v44  ;;  %v679_v32 = vsub.f32 1.0, %v678_v31 }
 0x36a   :  { %v350_v15 = vadd.f32 %v1009_v42, %v349_v17  ;;  %v680_v35 = vmul.f32 %v1011_v30, %v679_v32 }
 0x36c   :  { %v354_v16 = vsel %vm353_vm7, %v1009_v42, %v350_v15  ;;  %v681_v36 = vadd.f32 %v1011_v30, %v680_v35 }
 0x36d   :  { %v359_v11 = vsel %vm356_vm8, %v358_v18, %v354_v16 }
 0x36e   :  { %v445_v13 = vmul.f32 %v1306_v14, %v359_v11  ;;  %v971_v14 = vunpack.i.l.bf16 %v970_v3 }
 0x370   :  { %912 = vmatmul.msk.f32.gmra.mxu1 %vm259_vm2, %v445_v13 }
 0x371   :  { %658 = vmatpush.msra.mxu1 %v971_v14 }
 0x373   :  { %659 = vmatpush.msra.mxu1 %v972_v45 }
 0x375   :  { %660 = vmatpush.msra.mxu1 %v976_v5 }
 0x377   :  { %661 = vmatpush.msra.mxu1 %v977_v0 }
 0x3ab   :  { %v586_v49 = vpop.f32.mrf.mxu0 }
 0x3b3   :  { %v589_v4 = vpop.f32.mrf.mxu0 }
 0x3b8   :  { %v516_v19 = vpop.f32.mrf.mxu2  ;;  %v551_v48 = vpop.f32.mrf.mxu3 }
 0x3b9   :  { %602 = vrot.lane.b32.xlu0 %v551_v48, %s1125_s21  ;;  %594 = vrot.lane.b32.xlu2 %v516_v19, %s1128_s25 }
 0x3c0   :  { %v519_v50 = vpop.f32.mrf.mxu2  ;;  %v554_v51 = vpop.f32.mrf.mxu3 }
 0x3c1   :  { %610 = vrot.lane.b32.xlu2 %v586_v49, %s1138_s7  ;;  %596 = vrot.lane.b32.xlu1 %v519_v50, %s1128_s25 }
 0x3c9   :  { %604 = vrot.lane.b32.xlu2 %v554_v51, %s1125_s21 }
 0x3d1   :  { %612 = vrot.lane.b32.xlu2 %v589_v4, %s1138_s7 }
 0x3df   :  { %v481_v2 = vpop.f32.mrf.mxu1 }
 0x3ed   :  { %v484_v61 = vpop.f32.mrf.mxu1 }
 0x413   :  { %v595_v52 = vpop.permute.xlu2 %594 }
 0x414   :  { %v616_v55 = vsel %vm116_vm1, %v481_v2, %v595_v52  ;;  %v729_v2 = vperm.slane %v1199_v8, 3 }
 0x41b   :  { %v611_v54 = vpop.permute.xlu2 %610 }
 0x423   :  { %v605_v58 = vpop.permute.xlu2 %604 }
 0x42b   :  { %v603_v59 = vpop.permute.xlu0 %602  ;;  %v613_v9 = vpop.permute.xlu2 %612 }
 0x42c   :  { %v618_v60 = vsel %vm259_vm2, %v616_v55, %v603_v59 }
 0x42d   :  { %v621_v53 = vsel %vm620_vm9, %v618_v60, %v611_v54 }
 0x42e   :  { %919 = vmatmul.msk.f32.vlgmr.msra.gmra.mxu1 %vm72_vm0, %v621_v53 }
 0x433   :  { %v597_v63 = vpop.permute.xlu1 %596 }
 0x434   :  { %v617_v62 = vsel %vm116_vm1, %v484_v61, %v597_v63  ;;  %vm682_vm1 = vweird.f32 %v1011_v30 }
 0x435   :  { %v619_v10 = vsel %vm259_vm2, %v617_v62, %v605_v58  ;;  %v1466_v39 = vsel %vm682_vm1, %v1011_v30, %v681_v36 }
 0x436   :  { %v622_v12 = vsel %vm620_vm9, %v619_v10, %v613_v9 }
 0x437   :  { %920 = vmatmul.msk.f32.gmra.mxu1 %vm72_vm0, %v622_v12 }
 0x4ab   :  { %v663_v21 = vpop.f32.mrf.mxu1 }
 0x4ac   :  { %v664_v22 = vadd.f32 %v663_v21, %v623_v20 }
 0x4ae   :  { %v1451_v23 = vadd.f32 %v664_v22, %v1190_v6 }
 0x4b0   :  { %v671_v56 = vsel %vm72_vm0, %v1451_v23, 0.0  ;;  %v686_v24 = vmul.f32 %v1451_v23, %v1451_v23 }
 0x4b1   :  { %672 = vadd.xlane.f32.xlu0 %v671_v56 }
 0x4b2   :  { %v688_v1 = vsel %vm72_vm0, %v686_v24, 0.0 }
 0x4b3   :  { %689 = vadd.xlane.f32.xlu2 %v688_v1 }
 0x4b4   :  { %v666_v33 = vpop.f32.mrf.mxu1 }
 0x4b5   :  { %v667_v25 = vadd.f32 %v666_v33, %v623_v20 }
 0x4b7   :  { %v1459_v26 = vadd.f32 %v667_v25, %v1195_v7  ;;  %v69_v7 = vld [vmem:[#allocation5 + $0x38] sm:$0xff] }
 0x4b8   :  { %751 = vmatpush.msra.mxu2 %v69_v7 }
 0x4b9   :  { %v674_v28 = vsel %vm72_vm0, %v1459_v26, 0.0  ;;  %v687_v6 = vmul.f32 %v1459_v26, %v1459_v26 }
 0x4ba   :  { %675 = vadd.xlane.f32.xlu1 %v674_v28  ;;  %752 = vmatpush.msra.mxu2 %v67_v38  ;;  %v764_v28 = vperm.slane %v1199_v8, 5 }
 0x4bb   :  { %v691_v29 = vsel %vm72_vm0, %v687_v6, 0.0 }
 0x4bc   :  { %692 = vadd.xlane.f32.xlu0 %v691_v29  ;;  %753 = vmatpush.msra.mxu2 %v65_v37 }
 0x4be   :  { %754 = vmatpush.msra.mxu2 %v63_v41 }
 0x4cb   :  { %775 = vrot.lane.b32.xlu2 %v69_v7, %s1140_s8 }
 0x4d0   :  { %773 = vrot.lane.b32.xlu0 %v67_v38, %s1140_s8 }
 0x4d3   :  { %771 = vrot.lane.b32.xlu1 %v65_v37, %s1140_s8 }
 0x4d8   :  { %769 = vrot.lane.b32.xlu0 %v63_v41, %s1140_s8 }
 0x524   :  { %v673_v34 = vpop.xlane.xlu0 %672 }
 0x525   :  { %v684_v40 = vmul.f32 %v1466_v39, %v673_v34 }
 0x526   :  { %v690_v42 = vpop.xlane.xlu2 %689 }
 0x527   :  { %v696_v43 = vmul.f32 %v684_v40, %v684_v40  ;;  %v694_v44 = vmul.f32 %v690_v42, %v1466_v39  ;;  %v722_v4 = vsub.f32 %v1451_v23, %v684_v40  ;;  %v732_v23 = vperm.slane %v1199_v8, 4 }
 0x529   :  { %v698_v46 = vsub.f32 %v694_v44, %v696_v43 }
 0x52b   :  { %v700_v17 = vadd.f32 1e-05, %v698_v46 }
 0x52d   :  { %1012 = vrsqrt.f32 %v700_v17  ;;  %v676_v47 = vpop.xlane.xlu1 %675  ;;  %vm708_vm10 = vweird.f32 %v700_v17 }
 0x52e   :  { %v685_v15 = vmul.f32 %v1466_v39, %v676_v47  ;;  %v776_v12 = vpop.permute.xlu2 %775 }
 0x52f   :  { %v693_v18 = vpop.xlane.xlu0 %692  ;;  %923 = vmatpush.xpose.msk.msra.mxu3 %vm777_vm15, %v776_v12 }
 0x530   :  { %v697_v16 = vmul.f32 %v685_v15, %v685_v15  ;;  %v695_v11 = vmul.f32 %v693_v18, %v1466_v39  ;;  %v723_v61 = vsub.f32 %v1459_v26, %v685_v15 }
 0x532   :  { %v699_v13 = vsub.f32 %v695_v11, %v697_v16 }
 0x533   :  { %v1013_v19 = vpop.eup %1012 }
 0x534   :  { %v703_v48 = vmul.f32 %v1013_v19, %v700_v17  ;;  %v701_v49 = vadd.f32 1e-05, %v699_v13  ;;  %vm709_vm2 = vweird.f32 %v1013_v19 }
 0x535   :  { %vm710_vm11 = vmor %vm708_vm10, %vm709_vm2 }
 0x536   :  { %v704_v50 = vmul.f32 %v1013_v19, %v703_v48  ;;  %1014 = vrsqrt.f32 %v701_v49  ;;  %vm718_vm13 = vweird.f32 %v701_v49 }
 0x538   :  { %v705_v51 = vmul.f32 0.5, %v704_v50 }
 0x53a   :  { %v706_v3 = vsub.f32 1.5, %v705_v51 }
 0x53c   :  { %v1015_v45 = vpop.eup %1014  ;;  %v707_v14 = vmul.f32 %v1013_v19, %v706_v3 }
 0x53d   :  { %v713_v0 = vmul.f32 %v1015_v45, %v701_v49  ;;  %vm719_vm12 = vweird.f32 %v1015_v45 }
 0x53e   :  { %v711_v5 = vsel %vm710_vm11, %v1013_v19, %v707_v14  ;;  %vm720_vm14 = vmor %vm718_vm13, %vm719_vm12 }
 0x53f   :  { %v724_v52 = vmul.f32 %v722_v4, %v711_v5  ;;  %v714_v54 = vmul.f32 %v1015_v45, %v713_v0 }
 0x541   :  { %v727_v55 = vmul.f32 %v726_v27, %v724_v52  ;;  %v715_v58 = vmul.f32 0.5, %v714_v54 }
 0x542   :  { %v774_v20 = vpop.permute.xlu0 %773 }
 0x543   :  { %v716_v59 = vsub.f32 1.5, %v715_v58  ;;  %v730_v60 = vadd.f32 %v729_v2, %v727_v55  ;;  %924 = vmatpush.xpose.msk.msra.mxu3 %vm777_vm15, %v774_v20 }
 0x545   :  { %v717_v53 = vmul.f32 %v1015_v45, %v716_v59  ;;  %921 = vmatmul.msk.f32.vlgmr.msra.gmra.mxu2 %vm72_vm0, %v730_v60  ;;  %v772_v21 = vpop.permute.xlu1 %771 }
 0x547   :  { %v721_v63 = vsel %vm720_vm14, %v1015_v45, %v717_v53  ;;  %925 = vmatpush.xpose.msk.msra.mxu3 %vm777_vm15, %v772_v21 }
 0x548   :  { %v725_v62 = vmul.f32 %v723_v61, %v721_v63 }
 0x54a   :  { %v728_v9 = vmul.f32 %v726_v27, %v725_v62  ;;  %v770_v22 = vpop.permute.xlu0 %769  ;;  %v1020_v27 = vld [vmem:[#allocation7] sm:$0xff] }
 0x54b   :  { %926 = vmatpush.xpose.msk.msra.mxu3 %vm777_vm15, %v770_v22  ;;  %v865_v0 = vperm.slane %v1020_v27, 6  ;;  %v868_v54 = vperm.slane %v1020_v27, 7 }
 0x54c   :  { %v731_v10 = vadd.f32 %v729_v2, %v728_v9 }
 0x54e   :  { %922 = vmatmul.msk.f32.gmra.mxu2 %vm72_vm0, %v731_v10 }
 0x5c8   :  { %v756_v56 = vpop.f32.mrf.mxu2 }
 0x5c9   :  { %v757_v24 = vadd.f32 %v756_v56, %v732_v23 }
 0x5cb   :  { %v762_v1 = vmax.f32 %v757_v24, 0.0 }
 0x5cd   :  { %927 = vmatmul.msk.f32.vlgmr.msra.gmra.mxu3 %vm777_vm15, %v762_v1 }
 0x5d1   :  { %v759_v33 = vpop.f32.mrf.mxu2 }
 0x5d2   :  { %v760_v25 = vadd.f32 %v759_v33, %v732_v23 }
 0x5d4   :  { %v763_v26 = vmax.f32 %v760_v25, 0.0 }
 0x5d6   :  { %928 = vmatmul.msk.f32.gmra.mxu3 %vm777_vm15, %v763_v26 }
 0x650   :  { %v809_v6 = vpop.f32.mrf.mxu3 }
 0x651   :  { %v810_v29 = vadd.f32 %v809_v6, %v764_v28 }
 0x653   :  { %v815_v57 = vadd.f32 %v810_v29, %v730_v60 }
 0x655   :  { %v817_v30 = vsel %vm72_vm0, %v815_v57, 0.0  ;;  %v825_v31 = vmul.f32 %v815_v57, %v815_v57 }
 0x656   :  { %818 = vadd.xlane.f32.xlu2 %v817_v30 }
 0x657   :  { %v827_v32 = vsel %vm72_vm0, %v825_v31, 0.0 }
 0x658   :  { %828 = vadd.xlane.f32.xlu0 %v827_v32 }
 0x659   :  { %v812_v35 = vpop.f32.mrf.mxu3 }
 0x65a   :  { %v813_v36 = vadd.f32 %v812_v35, %v764_v28 }
 0x65c   :  { %v816_v7 = vadd.f32 %v813_v36, %v731_v10 }
 0x65e   :  { %v820_v38 = vsel %vm72_vm0, %v816_v7, 0.0  ;;  %v826_v37 = vmul.f32 %v816_v7, %v816_v7 }
 0x65f   :  { %821 = vadd.xlane.f32.xlu1 %v820_v38 }
 0x660   :  { %v830_v34 = vsel %vm72_vm0, %v826_v37, 0.0 }
 0x661   :  { %831 = vadd.xlane.f32.xlu2 %v830_v34 }
 0x6c9   :  { %v819_v8 = vpop.xlane.xlu2 %818 }
 0x6ca   :  { %v823_v40 = vmul.f32 %v819_v8, %v1466_v39 }
 0x6cb   :  { %v829_v41 = vpop.xlane.xlu0 %828 }
 0x6cc   :  { %v835_v42 = vmul.f32 %v823_v40, %v823_v40  ;;  %v833_v43 = vmul.f32 %v829_v41, %v1466_v39  ;;  %v861_v14 = vsub.f32 %v815_v57, %v823_v40 }
 0x6ce   :  { %v837_v44 = vsub.f32 %v833_v43, %v835_v42 }
 0x6d0   :  { %v839_v46 = vadd.f32 1e-05, %v837_v44 }
 0x6d2   :  { %1016 = vrsqrt.f32 %v839_v46  ;;  %v822_v17 = vpop.xlane.xlu1 %821  ;;  %vm847_vm4 = vweird.f32 %v839_v46 }
 0x6d3   :  { %v824_v47 = vmul.f32 %v822_v17, %v1466_v39 }
 0x6d4   :  { %v832_v15 = vpop.xlane.xlu2 %831 }
 0x6d5   :  { %v836_v18 = vmul.f32 %v824_v47, %v824_v47  ;;  %v834_v16 = vmul.f32 %v832_v15, %v1466_v39  ;;  %v862_v53 = vsub.f32 %v816_v7, %v824_v47 }
 0x6d7   :  { %v838_v11 = vsub.f32 %v834_v16, %v836_v18 }
 0x6d8   :  { %v1017_v13 = vpop.eup %1016 }
 0x6d9   :  { %v842_v19 = vmul.f32 %v1017_v13, %v839_v46  ;;  %v840_v48 = vadd.f32 1e-05, %v838_v11  ;;  %vm848_vm3 = vweird.f32 %v1017_v13 }
 0x6da   :  { %vm849_vm5 = vmor %vm847_vm4, %vm848_vm3 }
 0x6db   :  { %v843_v49 = vmul.f32 %v1017_v13, %v842_v19  ;;  %1018 = vrsqrt.f32 %v840_v48  ;;  %vm857_vm7 = vweird.f32 %v840_v48 }
 0x6dd   :  { %v844_v50 = vmul.f32 0.5, %v843_v49 }
 0x6df   :  { %v845_v51 = vsub.f32 1.5, %v844_v50 }
 0x6e1   :  { %v1019_v3 = vpop.eup %1018  ;;  %v846_v45 = vmul.f32 %v1017_v13, %v845_v51 }
 0x6e2   :  { %v852_v4 = vmul.f32 %v1019_v3, %v840_v48  ;;  %vm858_vm6 = vweird.f32 %v1019_v3 }
 0x6e3   :  { %v850_v5 = vsel %vm849_vm5, %v1017_v13, %v846_v45  ;;  %vm859_vm8 = vmor %vm857_vm7, %vm858_vm6 }
 0x6e4   :  { %v863_v52 = vmul.f32 %v861_v14, %v850_v5  ;;  %v853_v39 = vmul.f32 %v1019_v3, %v852_v4 }
 0x6e6   :  { %v854_v2 = vmul.f32 0.5, %v853_v39  ;;  %v866_v55 = vmul.f32 %v865_v0, %v863_v52 }
 0x6e8   :  { %v855_v58 = vsub.f32 1.5, %v854_v2  ;;  %v869_v59 = vadd.f32 %v868_v54, %v866_v55 }
 0x6ea   :  { %v856_v60 = vmul.f32 %v1019_v3, %v855_v58  ;;  %871 = vst.msk [vmem:[#allocation8] sm:$0xff] %vm72_vm0, %v869_v59 }
 0x6ec   :  { %v860_v61 = vsel %vm859_vm8, %v1019_v3, %v856_v60 }
 0x6ed   :  { %v864_v63 = vmul.f32 %v862_v53, %v860_v61 }
 0x6ef   :  { %v867_v62 = vmul.f32 %v865_v0, %v864_v63 }
 0x6f1   :  { %v870_v9 = vadd.f32 %v868_v54, %v867_v62 }
 0x6f3   :  { %872 = vst.msk [vmem:[#allocation8 + $0x8] sm:$0xff] %vm72_vm0, %v870_v9 }
 0x6f4   :  { %885 = dma.vmem_to_hbm [thread:$0]  %s878_s10, 256, %s880_s13, [#allocation4], %s1127_s24, %s1127_s24, %s1128_s25  }
 0x6f5   :  { %1121 = dma.done.wait [#allocation4], 256  }
 0x6f6   :  { %1122 = vsyncadd [#allocation4], 4294967040 }
 0x6f7   :  { %890 = vsyncpa [#allocation3], 1 }
 0x6f8   :  { %891 = vsyncpa [#allocation6], 1 }
 0x6f9   :  { %892 = vsyncpa [#allocation4], 1 }

</bundles_post_ra>
